<compile_context>
chip_gen: v6e
topology: v6e:2x2x1
jax: 0.10.0
libtpu: 0.0.40
codegen_flags: <defaults>
</compile_context>

<pallas_src>
import functools

import jax
import jax.numpy as jnp
import numpy as np
from jax import lax
from jax.experimental import pallas as pl
from jax.experimental.pallas import tpu as pltpu


def _round_up(x, m):
    return ((x + m - 1) // m) * m


# ---------------------------------------------------------------------------
# Kernel: grid = (B, P, spatial_tiles_per_P).  Each step streams one
# (tile_r, 128) spatial tile in register-resident row chunks, computes the
# clamped target-class log-softmax, the per-batch alpha weighting and the focal
# term, and accumulates into a resident per-(b,p) (8,128) output block
# (scaled by loss_weight / (B*S) on the last spatial step).
# ---------------------------------------------------------------------------
def _focal_kernel(alpha_ref, pred_ref, tgt_ref, out_ref, *,
                  C, gamma, scale, chunk, n_chunks, unroll,
                  ragged, rows_valid, tile_r, tiles_per_p):
    b = pl.program_id(0)
    p = pl.program_id(1)
    s = pl.program_id(2)

    # Per-batch class alphas: C scalar SMEM reads, hoisted out of the chunk loop.
    alphas = [alpha_ref[b * C + c] for c in range(C)]

    if ragged:
        # Only compiled in when the last spatial tile overruns the true row count
        # (zero-copy path with a non-dividing tile).  Iota is a hoisted constant;
        # per-chunk cost is one add + one compare + one select.
        row_iota = lax.broadcasted_iota(jnp.int32, (chunk, 128), 0)
        tile_row0 = (p * tiles_per_p + s) * tile_r

    def chunk_body(cc, acc):
        r0 = pl.multiple_of(cc * chunk, chunk)
        # Load targets and each channel slab exactly once per chunk; everything below
        # stays register-resident ((chunk,128) slabs, 1-2 vregs each).
        tgt = tgt_ref[0, 0, pl.ds(r0, chunk), :]                          # int32
        x = [pred_ref[0, c, pl.ds(r0, chunk), :].astype(jnp.float32)
             for c in range(C)]

        m = x[0]
        for c in range(1, C):
            m = jnp.maximum(m, x[c])

        zeros = jnp.zeros_like(m)
        sum_e, logit_t, e_t, alpha_t = zeros, zeros, zeros, zeros
        for c in range(C):
            e_c = jnp.exp(x[c] - m)                                       # EUP
            sum_e = sum_e + e_c
            sel = tgt == c
            logit_t = jnp.where(sel, x[c], logit_t)
            # e_t select lets prob reuse the exps (no 2nd EUP exp).  On v7x, if a bundle
            # dump shows the VALU slot binding, drop this select and use prob = exp(lp).
            e_t = jnp.where(sel, e_c, e_t)
            alpha_t = jnp.where(sel, alphas[c], alpha_t)

        # target-class log-softmax, clamped like torch.clamp(log_softmax, min=-1000)
        lp = jnp.maximum(logit_t - m - jnp.log(sum_e), -1000.0)
        prob = e_t * pl.reciprocal(sum_e, approx=True)
        t = jnp.maximum(1.0 - prob, 0.0)
        if gamma == 1.0:
            focal = t
        elif gamma == 1.5:
            focal = t * jnp.sqrt(t)                                       # pow -> sqrt+mul
        elif gamma == 2.0:
            focal = t * t
        else:
            focal = t ** gamma
        loss = focal * (alpha_t * (-lp))

        if ragged:  # mask rows past the true spatial extent (last, partial tile only)
            valid = (row_iota + (tile_row0 + r0)) < rows_valid
            loss = jnp.where(valid, loss, 0.0)

        return acc + loss

    acc = lax.fori_loop(0, n_chunks, chunk_body,
                        jnp.zeros((chunk, 128), jnp.float32), unroll=unroll)

    # fold the (chunk,128) running sum into the resident (8,128) output block
    partial = acc[0:8, :]
    for k in range(1, chunk // 8):
        partial = partial + acc[k * 8:(k + 1) * 8, :]

    @pl.when(s == 0)
    def _():
        out_ref[...] = jnp.zeros(out_ref.shape, out_ref.dtype)

    out_ref[0, 0, :, :] = out_ref[0, 0, :, :] + partial

    @pl.when(s == pl.num_programs(2) - 1)
    def _():
        out_ref[...] = out_ref[...] * scale


# ---------------------------------------------------------------------------
# Per-batch alpha construction (tiny parameter setup, plain JAX)
# ---------------------------------------------------------------------------
def _compute_alpha(B, C, alpha_background, alpha_foreground, additive_alpha,
                   label_indices_active):
    base = jnp.array([alpha_background] + [alpha_foreground] * (C - 1), jnp.float32)
    add = jnp.asarray(additive_alpha, jnp.float32)
    if label_indices_active is None:
        assert add.shape[0] == C, "additive_alpha must have out_channels entries"
        return jnp.broadcast_to(base + add, (B, C))
    # torch.nonzero(mask).squeeze() gather: pick the C active additive entries per batch
    mask = (label_indices_active != 0).astype(jnp.int32)
    idx = jnp.argsort(-mask, axis=1)[:, :C]
    idx = jnp.sort(idx, axis=1)
    return base[None, :] + add[idx]


def focal_loss_pallas(predictions, targets, label_indices_active=None, *,
                      loss_weight=1.0, alpha_background=0.1, alpha_foreground=0.1,
                      additive_alpha=(0.0, 0.9), gamma=1.5, tag="seg",
                      max_tile_voxels=262144, pred_compute_dtype=None):
    B, C, H, W, D = predictions.shape
    assert targets.shape == (B, H, W, D)
    S = H * W * D

    if pred_compute_dtype is not None:
        # opt-in: pass bf16 logits to ~halve HBM traffic (kernel upcasts per chunk)
        predictions = predictions.astype(pred_compute_dtype)

    # spatial layout: S -> (R, 128) so every per-voxel tensor is lane-dense
    R = pl.cdiv(S, 128)
    pred_itemsize = predictions.dtype.itemsize

    # ---- tile_r: rows of 128 lanes processed per grid step ----------------------
    # VMEM-aware cap: double-buffered (C preds + int32 targets) blocks <= ~20 MiB, which
    # fits every generation (v7x 64 MiB physical / 32 MiB scoped; v5e's 16 MiB default
    # scoped limit is raised via vmem_limit_bytes below).
    bytes_per_row = 128 * (C * pred_itemsize + 4)
    cap_vmem = max(8, ((20 << 20) // (2 * bytes_per_row)) // 8 * 8)
    cap_user = max(8, (max_tile_voxels // 128) // 8 * 8)
    cap = min(cap_vmem, cap_user)

    zero_copy = (S % 128 == 0) and (R % 8 == 0) and (R >= 8)

    if zero_copy:
        # No full-tensor pad copy: the reshape is a free, layout-preserving view.
        if R <= cap:
            tile_r, ragged = R, False
        else:
            # prefer an exactly-dividing tile (no ragged tail); otherwise take a full-size
            # tile and mask the overrun rows of the last grid step inside the kernel.
            tile_r = cap
            for cand in range(cap, max(8, cap // 2) - 1, -8):
                if R % cand == 0:
                    tile_r = cand
                    break
            ragged = (R % tile_r) != 0
        rows_total = R
        pred_in = predictions.reshape(B, C, R, 128)
        tgt_in = targets.astype(jnp.int32).reshape(B, 1, R, 128)
    else:
        # Rare path (spatial size not a multiple of 128): pad.  Padded targets get the -1
        # sentinel so no class matches -> alpha_t = 0 -> exactly zero contribution, and no
        # per-voxel mask is needed in the kernel.
        tile_r = min(cap, _round_up(R, 8))
        rows_total = _round_up(R, tile_r)
        pad = rows_total * 128 - S
        pred_in = jnp.pad(predictions.reshape(B, C, S),
                          ((0, 0), (0, 0), (0, pad))).reshape(B, C, rows_total, 128)
        tgt_in = jnp.pad(targets.astype(jnp.int32).reshape(B, 1, S),
                         ((0, 0), (0, 0), (0, pad)),
                         constant_values=-1).reshape(B, 1, rows_total, 128)
        ragged = False

    # chunk = rows held in vregs per inner-loop step; 16 keeps bf16 chunk loads on natural
    # (16,128) tiles, 8 covers tiny volumes (sub-32-bit preds upcast in that corner case).
    if pred_itemsize < 4 and tile_r % 16 != 0:
        pred_in = pred_in.astype(jnp.float32)
        pred_itemsize = 4
    chunk = 16 if tile_r % 16 == 0 else 8
    n_chunks = tile_r // chunk
    unroll = min(n_chunks, 2 if chunk == 16 else 4)

    n_s_tiles = pl.cdiv(rows_total, tile_r)
    # v7x has 2 TensorCores: when B alone cannot keep both busy (odd / ==1), split the
    # spatial tile range across a second "parallel" grid axis.
    P = 2 if (B % 2 == 1 and n_s_tiles % 2 == 0) else 1
    tiles_per_p = n_s_tiles // P

    alpha = _compute_alpha(B, C, alpha_background, alpha_foreground,
                           additive_alpha, label_indices_active)
    alpha_flat = alpha.astype(jnp.float32).reshape(B * C)

    kernel = functools.partial(
        _focal_kernel, C=C, gamma=float(gamma),
        scale=float(loss_weight) / float(B * S),
        chunk=chunk, n_chunks=n_chunks, unroll=unroll,
        ragged=ragged, rows_valid=R, tile_r=tile_r, tiles_per_p=tiles_per_p)

    dbuf_bytes = 2 * tile_r * 128 * (C * pred_itemsize + 4)
    vmem_limit = int(min(max(dbuf_bytes + (4 << 20), 16 << 20), 40 << 20))

    out = pl.pallas_call(
        kernel,
        out_shape=jax.ShapeDtypeStruct((P, B, 8, 128), jnp.float32),
        grid_spec=pltpu.PrefetchScalarGridSpec(
            num_scalar_prefetch=1,                      # alpha -> SMEM
            grid=(B, P, tiles_per_p),
            in_specs=[
                pl.BlockSpec((1, C, tile_r, 128),
                             lambda b, p, s, a: (b, 0, p * tiles_per_p + s, 0)),
                pl.BlockSpec((1, 1, tile_r, 128),
                             lambda b, p, s, a: (b, 0, p * tiles_per_p + s, 0)),
            ],
            out_specs=pl.BlockSpec((1, 1, 8, 128), lambda b, p, s, a: (p, b, 0, 0)),
        ),
        compiler_params=pltpu.CompilerParams(
            dimension_semantics=("parallel", "parallel", "arbitrary"),
            vmem_limit_bytes=vmem_limit),
    )(alpha_flat, pred_in, tgt_in)

    # per-(split, batch) (8,128) partials -> scalar (already scaled by loss_weight/(B*S))
    return {tag: jnp.sum(out)}


# ---------------------------------------------------------------------------
# Pure-JAX reference (sanity check only)
# ---------------------------------------------------------------------------
def focal_loss_ref(predictions, targets, alpha, *, loss_weight, gamma):
    B = predictions.shape[0]
    logsm = jnp.maximum(
        jax.nn.log_softmax(predictions.astype(jnp.float32), axis=1), -1000.0)
    t = targets.astype(jnp.int32)
    lp = jnp.take_along_axis(logsm, t[:, None], axis=1)[:, 0]        # (B,H,W,D)
    a_t = alpha[jnp.arange(B)[:, None, None, None], t]               # (B,H,W,D)
    lpw = -a_t * lp
    prob = jnp.exp(lp)
    return loss_weight * jnp.mean(jnp.maximum(1.0 - prob, 0.0) ** gamma * lpw)


if __name__ == "__main__":
    key = jax.random.PRNGKey(0)

    def run_check(B, C, H, W, D, additive_alpha, label_indices_active,
                  max_tile_voxels, k, pred_compute_dtype=None, name=""):
        kp, kt = jax.random.split(k)
        predictions = jax.random.normal(kp, (B, C, H, W, D), dtype=jnp.float32)
        targets = jax.random.randint(kt, (B, H, W, D), 0, C)
        gamma, loss_weight = 1.5, 1.0
        losses = focal_loss_pallas(
            predictions, targets, label_indices_active,
            loss_weight=loss_weight, alpha_background=0.1, alpha_foreground=0.1,
            additive_alpha=additive_alpha, gamma=gamma, tag="seg",
            max_tile_voxels=max_tile_voxels, pred_compute_dtype=pred_compute_dtype)
        loss = jax.block_until_ready(losses["seg"])
        ref_pred = predictions if pred_compute_dtype is None else \
            predictions.astype(pred_compute_dtype).astype(jnp.float32)
        alpha = _compute_alpha(B, C, 0.1, 0.1, additive_alpha, label_indices_active)
        ref = jax.block_until_ready(
            focal_loss_ref(ref_pred, targets, alpha,
                           loss_weight=loss_weight, gamma=gamma))
        assert np.allclose(np.asarray(loss), np.asarray(ref),
                           rtol=2e-3, atol=1e-5), (name, loss, ref)

    keys = jax.random.split(key, 6)

    # 1) base: [2,4,8,8,16], single spatial tile, default-alpha path
    run_check(2, 4, 8, 8, 16, (0.0, 0.9, 0.3, 0.2), None, 262144, keys[0], name="base")

    # 2) spatial size not a multiple of 128 (padded path, -1 sentinel targets)
    #    + label_indices_active gather path
    lia = jnp.array([[1, 1, 0, 1, 0, 1],
                     [1, 0, 1, 1, 1, 0]], dtype=jnp.int32)
    run_check(2, 4, 5, 6, 7, (0.0, 0.9, 0.3, 0.2, 0.5, 0.1), lia, 262144, keys[1],
              name="padded")

    # 3) multi-tile spatial accumulation (tiny tile cap forces 2 grid steps along s)
    run_check(2, 4, 8, 8, 32, (0.0, 0.9, 0.3, 0.2), None, 1024, keys[2], name="multi")

    # 4) B=1 -> spatial split across a second parallel grid axis (v7x 2-TC path)
    run_check(1, 4, 8, 8, 32, (0.0, 0.9, 0.3, 0.2), None, 1024, keys[3], name="psplit")

    # 5) ragged zero-copy path: R=40 rows, tile_r=24 -> last tile masked in-kernel
    run_check(1, 3, 8, 10, 64, (0.0, 0.9, 0.3), None, 3072, keys[4], name="ragged")

    # 6) bf16 logits (halved HBM traffic path), 16-row chunks
    run_check(2, 4, 8, 8, 32, (0.0, 0.9, 0.3, 0.2), None, 262144, keys[5],
              pred_compute_dtype=jnp.bfloat16, name="bf16")

    print("KERNEL_OK")
</pallas_src>

<mosaic_0001>
module attributes {stable_mosaic.version = 11 : i64} {
  func.func @_focal_kernel(%arg0: i32, %arg1: i32, %arg2: i32, %arg3: memref<8xf32, #tpu.memory_space<smem>>, %arg4: memref<1x4x8x128xf32, #tpu.memory_space<vmem>>, %arg5: memref<1x1x8x128xi32, #tpu.memory_space<vmem>>, %arg6: memref<1x1x8x128xf32, #tpu.memory_space<vmem>>) attributes {dimension_semantics = [#tpu.dimension_semantics<parallel>, #tpu.dimension_semantics<parallel>, #tpu.dimension_semantics<arbitrary>], iteration_bounds = array<i64: 2, 1, 1>, scalar_prefetch = 1 : i64, scratch_operands = 0 : i64, tpu.core_type = #tpu.core_type<tc>, window_params = [{transform_indices = @transform_0, window_bounds = array<i64: 1, 4, 8, 128>}, {transform_indices = @transform_1, window_bounds = array<i64: 1, 1, 8, 128>}, {transform_indices = @transform_2, window_bounds = array<i64: 1, 1, 8, 128>}]} {
    %c4_i32 = arith.constant 4 : i32
    %0 = arith.muli %arg0, %c4_i32 : i32
    %c0_i32 = arith.constant 0 : i32
    %1 = arith.addi %0, %c0_i32 : i32
    %2 = arith.index_cast %1 : i32 to index
    %3 = memref.load %arg3[%2] : memref<8xf32, #tpu.memory_space<smem>>
    %c4_i32_0 = arith.constant 4 : i32
    %4 = arith.muli %arg0, %c4_i32_0 : i32
    %c1_i32 = arith.constant 1 : i32
    %5 = arith.addi %4, %c1_i32 : i32
    %6 = arith.index_cast %5 : i32 to index
    %7 = memref.load %arg3[%6] : memref<8xf32, #tpu.memory_space<smem>>
    %c4_i32_1 = arith.constant 4 : i32
    %8 = arith.muli %arg0, %c4_i32_1 : i32
    %c2_i32 = arith.constant 2 : i32
    %9 = arith.addi %8, %c2_i32 : i32
    %10 = arith.index_cast %9 : i32 to index
    %11 = memref.load %arg3[%10] : memref<8xf32, #tpu.memory_space<smem>>
    %c4_i32_2 = arith.constant 4 : i32
    %12 = arith.muli %arg0, %c4_i32_2 : i32
    %c3_i32 = arith.constant 3 : i32
    %13 = arith.addi %12, %c3_i32 : i32
    %14 = arith.index_cast %13 : i32 to index
    %15 = memref.load %arg3[%14] : memref<8xf32, #tpu.memory_space<smem>>
    %cst = arith.constant 0.000000e+00 : f32
    %16 = vector.broadcast %cst : f32 to vector<8x128xf32>
    %c0_i32_3 = arith.constant 0 : i32
    %c8_i32 = arith.constant 8 : i32
    %17 = arith.muli %c0_i32_3, %c8_i32 : i32
    %18 = tpu.assume_multiple %17, 8 : i32
    %c0 = arith.constant 0 : index
    %c0_4 = arith.constant 0 : index
    %19 = arith.index_cast %18 : i32 to index
    %c0_5 = arith.constant 0 : index
    %20 = vector.load %arg5[%c0, %c0_4, %19, %c0_5] : memref<1x1x8x128xi32, #tpu.memory_space<vmem>>, vector<1x1x8x128xi32>
    %21 = vector.shape_cast %20 : vector<1x1x8x128xi32> to vector<8x128xi32>
    %c0_6 = arith.constant 0 : index
    %c0_7 = arith.constant 0 : index
    %22 = arith.index_cast %18 : i32 to index
    %c0_8 = arith.constant 0 : index
    %23 = vector.load %arg4[%c0_6, %c0_7, %22, %c0_8] : memref<1x4x8x128xf32, #tpu.memory_space<vmem>>, vector<1x1x8x128xf32>
    %24 = vector.shape_cast %23 : vector<1x1x8x128xf32> to vector<8x128xf32>
    %c0_9 = arith.constant 0 : index
    %c1 = arith.constant 1 : index
    %25 = arith.index_cast %18 : i32 to index
    %c0_10 = arith.constant 0 : index
    %26 = vector.load %arg4[%c0_9, %c1, %25, %c0_10] : memref<1x4x8x128xf32, #tpu.memory_space<vmem>>, vector<1x1x8x128xf32>
    %27 = vector.shape_cast %26 : vector<1x1x8x128xf32> to vector<8x128xf32>
    %c0_11 = arith.constant 0 : index
    %c2 = arith.constant 2 : index
    %28 = arith.index_cast %18 : i32 to index
    %c0_12 = arith.constant 0 : index
    %29 = vector.load %arg4[%c0_11, %c2, %28, %c0_12] : memref<1x4x8x128xf32, #tpu.memory_space<vmem>>, vector<1x1x8x128xf32>
    %30 = vector.shape_cast %29 : vector<1x1x8x128xf32> to vector<8x128xf32>
    %c0_13 = arith.constant 0 : index
    %c3 = arith.constant 3 : index
    %31 = arith.index_cast %18 : i32 to index
    %c0_14 = arith.constant 0 : index
    %32 = vector.load %arg4[%c0_13, %c3, %31, %c0_14] : memref<1x4x8x128xf32, #tpu.memory_space<vmem>>, vector<1x1x8x128xf32>
    %33 = vector.shape_cast %32 : vector<1x1x8x128xf32> to vector<8x128xf32>
    %34 = arith.maximumf %24, %27 : vector<8x128xf32>
    %35 = arith.maximumf %34, %30 : vector<8x128xf32>
    %36 = arith.maximumf %35, %33 : vector<8x128xf32>
    %cst_15 = arith.constant 0.000000e+00 : f32
    %37 = vector.broadcast %cst_15 : f32 to vector<8x128xf32>
    %38 = arith.subf %24, %36 : vector<8x128xf32>
    %39 = math.exp %38 : vector<8x128xf32>
    %40 = arith.addf %37, %39 : vector<8x128xf32>
    %c0_i32_16 = arith.constant 0 : i32
    %41 = vector.broadcast %c0_i32_16 : i32 to vector<8x128xi32>
    %42 = arith.cmpi eq, %21, %41 : vector<8x128xi32>
    %43 = arith.select %42, %24, %37 : vector<8x128xi1>, vector<8x128xf32>
    %44 = arith.select %42, %39, %37 : vector<8x128xi1>, vector<8x128xf32>
    %45 = vector.broadcast %3 : f32 to vector<8x128xf32>
    %46 = arith.select %42, %45, %37 : vector<8x128xi1>, vector<8x128xf32>
    %47 = arith.subf %27, %36 : vector<8x128xf32>
    %48 = math.exp %47 : vector<8x128xf32>
    %49 = arith.addf %40, %48 : vector<8x128xf32>
    %c1_i32_17 = arith.constant 1 : i32
    %50 = vector.broadcast %c1_i32_17 : i32 to vector<8x128xi32>
    %51 = arith.cmpi eq, %21, %50 : vector<8x128xi32>
    %52 = arith.select %51, %27, %43 : vector<8x128xi1>, vector<8x128xf32>
    %53 = arith.select %51, %48, %44 : vector<8x128xi1>, vector<8x128xf32>
    %54 = vector.broadcast %7 : f32 to vector<8x128xf32>
    %55 = arith.select %51, %54, %46 : vector<8x128xi1>, vector<8x128xf32>
    %56 = arith.subf %30, %36 : vector<8x128xf32>
    %57 = math.exp %56 : vector<8x128xf32>
    %58 = arith.addf %49, %57 : vector<8x128xf32>
    %c2_i32_18 = arith.constant 2 : i32
    %59 = vector.broadcast %c2_i32_18 : i32 to vector<8x128xi32>
    %60 = arith.cmpi eq, %21, %59 : vector<8x128xi32>
    %61 = arith.select %60, %30, %52 : vector<8x128xi1>, vector<8x128xf32>
    %62 = arith.select %60, %57, %53 : vector<8x128xi1>, vector<8x128xf32>
    %63 = vector.broadcast %11 : f32 to vector<8x128xf32>
    %64 = arith.select %60, %63, %55 : vector<8x128xi1>, vector<8x128xf32>
    %65 = arith.subf %33, %36 : vector<8x128xf32>
    %66 = math.exp %65 : vector<8x128xf32>
    %67 = arith.addf %58, %66 : vector<8x128xf32>
    %c3_i32_19 = arith.constant 3 : i32
    %68 = vector.broadcast %c3_i32_19 : i32 to vector<8x128xi32>
    %69 = arith.cmpi eq, %21, %68 : vector<8x128xi32>
    %70 = arith.select %69, %33, %61 : vector<8x128xi1>, vector<8x128xf32>
    %71 = arith.select %69, %66, %62 : vector<8x128xi1>, vector<8x128xf32>
    %72 = vector.broadcast %15 : f32 to vector<8x128xf32>
    %73 = arith.select %69, %72, %64 : vector<8x128xi1>, vector<8x128xf32>
    %74 = arith.subf %70, %36 : vector<8x128xf32>
    %75 = math.log %67 : vector<8x128xf32>
    %76 = arith.subf %74, %75 : vector<8x128xf32>
    %cst_20 = arith.constant -1.000000e+03 : f32
    %77 = vector.broadcast %cst_20 : f32 to vector<8x128xf32>
    %78 = arith.maximumf %76, %77 : vector<8x128xf32>
    %79 = tpu.reciprocal %67 {approx = true} : vector<8x128xf32> -> vector<8x128xf32>
    %80 = arith.mulf %71, %79 : vector<8x128xf32>
    %cst_21 = arith.constant 1.000000e+00 : f32
    %81 = vector.broadcast %cst_21 : f32 to vector<8x128xf32>
    %82 = arith.subf %81, %80 : vector<8x128xf32>
    %cst_22 = arith.constant 0.000000e+00 : f32
    %83 = vector.broadcast %cst_22 : f32 to vector<8x128xf32>
    %84 = arith.maximumf %82, %83 : vector<8x128xf32>
    %85 = math.sqrt %84 : vector<8x128xf32>
    %86 = arith.mulf %84, %85 : vector<8x128xf32>
    %cst_23 = arith.constant 0.000000e+00 : f32
    %87 = vector.broadcast %cst_23 : f32 to vector<8x128xf32>
    %88 = arith.subf %87, %78 : vector<8x128xf32>
    %89 = arith.mulf %73, %88 : vector<8x128xf32>
    %90 = arith.mulf %86, %89 : vector<8x128xf32>
    %91 = arith.addf %16, %90 : vector<8x128xf32>
    %c1_i32_24 = arith.constant 1 : i32
    %c0_i32_25 = arith.constant 0 : i32
    %92 = arith.cmpi eq, %arg2, %c0_i32_25 : i32
    %93 = arith.extui %92 : i1 to i32
    %c0_i32_26 = arith.constant 0 : i32
    %94 = arith.cmpi ne, %93, %c0_i32_26 : i32
    scf.if %94 {
      %cst_37 = arith.constant 0.000000e+00 : f32
      %104 = vector.broadcast %cst_37 : f32 to vector<1x1x8x128xf32>
      %c0_38 = arith.constant 0 : index
      %c0_39 = arith.constant 0 : index
      %c0_40 = arith.constant 0 : index
      %c0_41 = arith.constant 0 : index
      %105 = vector.load %arg6[%c0_38, %c0_39, %c0_40, %c0_41] : memref<1x1x8x128xf32, #tpu.memory_space<vmem>>, vector<1x1x8x128xf32>
      tpu.vector_store %arg6[%c0_38, %c0_39, %c0_40, %c0_41], %104 {strides = array<i32>} : memref<1x1x8x128xf32, #tpu.memory_space<vmem>>, vector<1x1x8x128xf32>,
    } else {
    }
    %c0_27 = arith.constant 0 : index
    %c0_28 = arith.constant 0 : index
    %c0_29 = arith.constant 0 : index
    %c0_30 = arith.constant 0 : index
    %95 = vector.load %arg6[%c0_27, %c0_28, %c0_29, %c0_30] : memref<1x1x8x128xf32, #tpu.memory_space<vmem>>, vector<1x1x8x128xf32>
    %96 = vector.shape_cast %95 : vector<1x1x8x128xf32> to vector<8x128xf32>
    %97 = arith.addf %96, %91 : vector<8x128xf32>
    %c0_31 = arith.constant 0 : index
    %c0_32 = arith.constant 0 : index
    %c0_33 = arith.constant 0 : index
    %c0_34 = arith.constant 0 : index
    %98 = vector.load %arg6[%c0_31, %c0_32, %c0_33, %c0_34] : memref<1x1x8x128xf32, #tpu.memory_space<vmem>>, vector<1x1x8x128xf32>
    %99 = vector.shape_cast %98 : vector<1x1x8x128xf32> to vector<8x128xf32>
    %100 = vector.shape_cast %97 : vector<8x128xf32> to vector<1x1x8x128xf32>
    tpu.vector_store %arg6[%c0_31, %c0_32, %c0_33, %c0_34], %100 {strides = array<i32>} : memref<1x1x8x128xf32, #tpu.memory_space<vmem>>, vector<1x1x8x128xf32>,
    %c0_i32_35 = arith.constant 0 : i32
    %101 = arith.cmpi eq, %arg2, %c0_i32_35 : i32
    %102 = arith.extui %101 : i1 to i32
    %c0_i32_36 = arith.constant 0 : i32
    %103 = arith.cmpi ne, %102, %c0_i32_36 : i32
    scf.if %103 {
      %c0_37 = arith.constant 0 : index
      %c0_38 = arith.constant 0 : index
      %c0_39 = arith.constant 0 : index
      %c0_40 = arith.constant 0 : index
      %104 = vector.load %arg6[%c0_37, %c0_38, %c0_39, %c0_40] : memref<1x1x8x128xf32, #tpu.memory_space<vmem>>, vector<1x1x8x128xf32>
      %cst_41 = arith.constant 4.8828125E-4 : f32
      %105 = vector.broadcast %cst_41 : f32 to vector<1x1x8x128xf32>
      %106 = arith.mulf %104, %105 : vector<1x1x8x128xf32>
      %c0_42 = arith.constant 0 : index
      %c0_43 = arith.constant 0 : index
      %c0_44 = arith.constant 0 : index
      %c0_45 = arith.constant 0 : index
      %107 = vector.load %arg6[%c0_42, %c0_43, %c0_44, %c0_45] : memref<1x1x8x128xf32, #tpu.memory_space<vmem>>, vector<1x1x8x128xf32>
      tpu.vector_store %arg6[%c0_42, %c0_43, %c0_44, %c0_45], %106 {strides = array<i32>} : memref<1x1x8x128xf32, #tpu.memory_space<vmem>>, vector<1x1x8x128xf32>,
    } else {
    }
    return
  }
  func.func @transform_0(%arg0: i32, %arg1: i32, %arg2: i32, %arg3: memref<8xf32, #tpu.memory_space<smem>>) -> (i32, i32, i32, i32) {
    %c1_i32 = arith.constant 1 : i32
    %0 = arith.muli %arg1, %c1_i32 : i32
    %1 = arith.addi %0, %arg2 : i32
    %c0_i32 = arith.constant 0 : i32
    %c0_i32_0 = arith.constant 0 : i32
    %c0_i32_1 = arith.constant 0 : i32
    return %arg0, %c0_i32, %1, %c0_i32_0 : i32, i32, i32, i32
  }
  func.func @transform_1(%arg0: i32, %arg1: i32, %arg2: i32, %arg3: memref<8xf32, #tpu.memory_space<smem>>) -> (i32, i32, i32, i32) {
    %c1_i32 = arith.constant 1 : i32
    %0 = arith.muli %arg1, %c1_i32 : i32
    %1 = arith.addi %0, %arg2 : i32
    %c0_i32 = arith.constant 0 : i32
    %c0_i32_0 = arith.constant 0 : i32
    %c0_i32_1 = arith.constant 0 : i32
    return %arg0, %c0_i32, %1, %c0_i32_0 : i32, i32, i32, i32
  }
  func.func @transform_2(%arg0: i32, %arg1: i32, %arg2: i32, %arg3: memref<8xf32, #tpu.memory_space<smem>>) -> (i32, i32, i32, i32) {
    %c0_i32 = arith.constant 0 : i32
    %c0_i32_0 = arith.constant 0 : i32
    %c0_i32_1 = arith.constant 0 : i32
    return %arg1, %arg0, %c0_i32, %c0_i32_0 : i32, i32, i32, i32
  }
}

</mosaic_0001>

<bundles_post_ra>
// kernel: tpu_custom_call.1
= control target key start
LH: loop header
LB: loop body
LE: loop exit
PB: predicated region body
PF: predicated region fallthrough
CT: control target
= control target key end

     0   :  { %s721_s12 = smov [#allocation3]   ;;  %s929_s0 = inlined_call_operand.hbm [shape: f32[8], index: 0, kind: input, shape index: {}]   ;;  %s930_s1 = inlined_call_operand.hbm [shape: f32[2,4,8,128], index: 1, kind: input, shape index: {}]   ;;  %s931_s2 = inlined_call_operand.hbm [shape: s32[2,1,8,128], index: 2, kind: input, shape index: {}]   ;;  %s932_s3 = inlined_call_operand.hbm [shape: f32[1,2,8,128], index: 3, kind: output, shape index: {}]  }
   0x1   :  { %9 = dma.hbm_to_smem %s929_s0, 16, %s721_s12, [#allocation2] }
   0x2   :  { %683 = dma.done.wait [#allocation2], 16 }
   0x3   :  { %684 = vsyncadd [#allocation2], 4294967280 }
   0x4   :  { %11 = sfence }
   0x5   :  { %12 = vsyncpa [#allocation5], 0 }
   0x6   :  { %14 = vsyncpa [#allocation5 + $0x1], 0 }
   0x7   :  { %15 = vsyncpa [#allocation8], 0 }
   0x8   :  { %17 = vsyncpa [#allocation8 + $0x1], 0 }
   0x9   :  { %18 = vsyncpa [#allocation6], 0 }
   0xa   :  { %20 = vsyncpa [#allocation6 + $0x1], 0  ;;  %s750_s15 = smov 0   ;;  %s752_s16 = smov 0  }
   0xb   :  { %s754_s17 = smov 0   ;;  %s756_s18 = smov 0  }
   0xc   :  { %s758_s19 = smov 0   ;;  %s760_s0 = smov 0  }
   0xd LB: > { %s462_s20 = sadd.s32 4294967295, %s719_s0   ;;  %s463_s21 = sadd.s32 4294967294, %s719_s0   ;;  %s719_s0 = sphi %s760_s0, %s26_s0   ;;  %s715_s19 = sphi %s758_s19, %s944_s19   ;;  %s711_s18 = sphi %s756_s18, %s943_s18   ;;  %s707_s17 = sphi %s754_s17, %s942_s17   ;;  %s703_s16 = sphi %s752_s16, %s941_s16   ;;  %s699_s15 = sphi %s750_s15, %s940_s15  }
   0xe   : > { %s45_s22 = sadd.s32 1, %s715_s19  ;;  %s56_s23 = sadd.s32 1, %s707_s17 }
   0xf   : > { %p47_p0 = scmp.ge.s32.totalorder %s45_s22, 2  ;;  %p63_p1 = scmp.ne.s32.totalorder %s707_s17, %s703_s16 }
  0x10   : > { %p64_p2 = scmp.eq.s32.totalorder %s719_s0, 0  ;;  %p69_p3 = scmp.ne.s32.totalorder %s703_s16, %s699_s15 }
  0x11   : > { %s946_s22 = smov (%p47_p0, %s45_s22), 0  ;;  %p70_p5 = scmp.eq.s32.totalorder %s462_s20, 0 }
  0x12   : > { %p791_p4 = por %p64_p2, %p63_p1  ;;  %s51_s25 = ssub.s32 %s715_s19, %s946_s22 }
  0x13   : > { %p125_p6 = scmp.eq.s32.totalorder %s462_s20, 1  ;;  %p54_p7 = scmp.eq.s32.totalorder %s51_s25, 0 }
  0x14   : > { %p797_p8 = por %p70_p5, %p69_p3  ;;  %p131_p10 = scmp.eq.s32.totalorder %s463_s21, 1 }
  0x15   : > { %p801_p9 = por %p125_p6, %p63_p1  ;;  %p501_p13 = scmp.lt.s32.totalorder %s719_s0, 2 }
  0x16   : > { %s806_s28 = scalar_select %p54_p7, %s707_s17, %s56_s23  }
  0x17   : > { %p808_p11 = por %p131_p10, %p69_p3  ;;  %s815_s30 = sand.u32 1, %s707_s17  }
  0x18   : > { %s466_s4 = sshll.u32 %s815_s30, 5  ;;  %s483_s5 = sshll.u32 %s715_s19, 9 }
  0x19   : > { %s163_s8 = scalar_lea.hbm %s930_s1, %s483_s5  ;;  %s155_s9 = scalar_lea.vmem [#allocation4], %s466_s4 }
  0x1a   : > { %s164_s10 = sshll.u32 %s155_s9, 4  ;;  %p824_p0 = pnand %p501_p13, %p791_p4  ;;  %s165_s10 = int_to_ptr.vmem [resolvable:$true] %s164_s10 }
  0x1b   : > { %p471_p1 = scmp.ge.s32.totalorder %s719_s0, 1  ;;  %s152_s12 = scalar_lea.sflag [#allocation5], %s815_s30 }
  0x1c   : > { %p579_p2 = pneg %p824_p0  ;;  %s590_s13 = scalar_lea.vmem %s165_s10, 512 }
  0x1d   : > { %p591_p3 = scmp.ne.s32.totalorder %s165_s10, %s590_s13  ;;  %s722_s14 = smov [#allocation4]  }
  0x1e   : > { %s595_s20 = sshll.u32 %s722_s14, 4  ;;  %s596_s20 = int_to_ptr.vmem [resolvable:$false] %s595_s20 }
  0x1f   : > { %p593_p5 = pnand %p591_p3, %p579_p2  ;;  %s597_s21 = scalar_lea.vmem %s596_s20, 1024 }
  0x20   : > { %p598_p4 = scmp.lt.s32.totalorder %s165_s10, %s596_s20  ;;  %p599_p7 = scmp.lt.s32.totalorder %s597_s21, %s590_s13 }
  0x21   : > { %p594_p6 = pneg %p593_p5 }
  0x22   : > { %p600_p10 = por %p599_p7, %p598_p4 }
  0x24   : > { %p601_p13 = pnand %p600_p10, %p594_p6 }
  0x26   : > { %604 = shalt.err (!%p601_p13)
}
  0x27   : > { %s723_s23 = smov 128   ;;  %s724_s24 = smov 8  }
  0x28   : > { %493 = dma.hbm_to_vmem [thread:$0]  (!%p824_p0), %s163_s8, 512, %s165_s10, %s152_s12, %s723_s23, %s723_s23, %s724_s24  }
  0x29   : > { %p192_p3 = scmp.lt.s32.totalorder %s719_s0, 3  ;;  %s469_s25 = sshll.u32 %s815_s30, 3 }
  0x2a   : > { %s470_s4 = sshll.u32 %s715_s19, 7  ;;  %s178_s13 = scalar_lea.vmem [#allocation7], %s469_s25 }
  0x2b   : > { %p842_p5 = pnand %p471_p1, %p192_p3  ;;  %s185_s9 = scalar_lea.hbm %s931_s2, %s470_s4 }
  0x2c   : > { %s187_s14 = sshll.u32 %s178_s13, 4  ;;  %s175_s20 = scalar_lea.sflag [#allocation8], %s815_s30  ;;  %s188_s14 = int_to_ptr.vmem [resolvable:$true] %s187_s14 }
  0x2d   : > { %s618_s21 = scalar_lea.vmem %s188_s14, 128  ;;  %s725_s8 = smov [#allocation7]  }
  0x2e   : > { %p619_p6 = scmp.ne.s32.totalorder %s188_s14, %s618_s21  ;;  %s623_s10 = sshll.u32 %s725_s8, 4  ;;  %s624_s10 = int_to_ptr.vmem [resolvable:$false] %s623_s10 }
  0x2f   : > { %s625_s12 = scalar_lea.vmem %s624_s10, 256  ;;  %p626_p1 = scmp.lt.s32.totalorder %s188_s14, %s624_s10 }
  0x30   : > { %p621_p4 = pnand %p619_p6, %p579_p2  ;;  %p627_p10 = scmp.lt.s32.totalorder %s625_s12, %s618_s21 }
  0x32   : > { %p622_p7 = pneg %p621_p4  ;;  %p628_p13 = por %p627_p10, %p626_p1 }
  0x34   : > { %p629_p3 = pnand %p628_p13, %p622_p7 }
  0x36   : > { %632 = shalt.err (!%p629_p3)
}
  0x37   : > { %496 = dma.hbm_to_vmem [thread:$0]  (!%p824_p0), %s185_s9, 128, %s188_s14, %s175_s20  }
  0x38   : > { %196 = sbr.rel (%p842_p5) target bundleno = 154 (0x9a), region = 28  ;;  %s858_s30 = sand.u32 (!%p842_p5), 1, %s703_s16  }
  0x39   : > { %s472_s23 = sshll.u32 (!%p842_p5), %s858_s30, 5  ;;  %s199_s24 = scalar_lea.sflag (!%p842_p5), [#allocation5], %s858_s30 }
  0x3a   : > { %s202_s25 = scalar_lea.vmem (!%p842_p5), [#allocation4], %s472_s23 }
  0x3d   : > { %686 = dma.done.wait (%p797_p8), %s199_s24, 512  }
  0x3e   : > { %688 = vsyncadd (%p797_p8), %s199_s24, 4294966784  ;;  %s473_s11 = sshll.u32 %s858_s30, 3  ;;  %s208_s4 = scalar_lea.sflag [#allocation8], %s858_s30 }
  0x3f   : > { %s211_s5 = scalar_lea.vmem [#allocation7], %s473_s11 }
  0x40   : > { %690 = dma.done.wait (%p797_p8), %s208_s4, 128  }
  0x41   : > { %692 = vsyncadd (%p797_p8), %s208_s4, 4294967168  ;;  %v248_v0 = vld [vmem:[%s202_s25] sm:$0xff]  ;;  %v476_v1 = vld [vmem:[%s202_s25 + $0x8] sm:$0xff]  ;;  %s475_s26 = sshll.u32 %s711_s18, 2  ;;  %s480_s8 = sshll.u32 %s711_s18, 7 }
  0x42   : > { %v477_v2 = vld [vmem:[%s202_s25 + $0x10] sm:$0xff]  ;;  %v258_v3 = vmax.f32 %v248_v0, %v476_v1  ;;  %v478_v4 = vld [vmem:[%s202_s25 + $0x18] sm:$0xff]  ;;  %v247_v21 = vld [vmem:[%s211_s5] sm:$0xff]  ;;  %s240_s6 = sld [smem:[#allocation3 + %s475_s26]]  ;;  %s241_s7 = sadd.s32 1, %s475_s26 }
  0x43   : > { %vm265_vm0 = vcmp.eq.s32.totalorder %v247_v21, 0  ;;  %vm274_vm1 = vcmp.eq.s32.totalorder %v247_v21, 1  ;;  %vm283_vm2 = vcmp.eq.s32.totalorder %v247_v21, 2  ;;  %vm292_vm3 = vcmp.eq.s32.totalorder %v247_v21, 3  ;;  %s242_s9 = sld [smem:[#allocation3 + %s241_s7]]  ;;  %s243_s13 = sadd.s32 2, %s475_s26 }
  0x44   : > { %v259_v5 = vmax.f32 %v258_v3, %v477_v2  ;;  %v266_v25 = vsel %vm265_vm0, %v248_v0, 0.0  ;;  %s244_s14 = sld [smem:[#allocation3 + %s243_s13]]  ;;  %s245_s20 = sadd.s32 3, %s475_s26 }
  0x45   : > { %v275_v27 = vsel %vm274_vm1, %v476_v1, %v266_v25  ;;  %s246_s21 = sld [smem:[#allocation3 + %s245_s20]]  ;;  %s236_s10 = scalar_lea.vmem [#allocation9], %s473_s11 }
  0x46   : > { %v260_v6 = vmax.f32 %v259_v5, %v478_v4  ;;  %v284_v30 = vsel %vm283_vm2, %v477_v2, %v275_v27  ;;  %s348_s12 = sshll.u32 %s236_s10, 4  ;;  %s346_s25 = scalar_lea.hbm %s932_s3, %s480_s8  ;;  %s349_s12 = int_to_ptr.vmem [resolvable:$true] %s348_s12 }
  0x47   : > { %v293_v34 = vsel %vm292_vm3, %v478_v4, %v284_v30  ;;  %s333_s4 = scalar_lea.sflag [#allocation6], %s858_s30  ;;  %s633_s5 = scalar_lea.vmem %s349_s12, 128 }
  0x48   : > { %v261_v7 = vsub.f32 %v248_v0, %v260_v6  ;;  %v270_v8 = vsub.f32 %v476_v1, %v260_v6  ;;  %v279_v9 = vsub.f32 %v477_v2, %v260_v6  ;;  %v288_v10 = vsub.f32 %v478_v4, %v260_v6  ;;  %p634_p8 = scmp.ne.s32.totalorder %s349_s12, %s633_s5  ;;  %s726_s26 = smov [#allocation9]  }
  0x49   : > { %v297_v36 = vsub.f32 %v293_v34, %v260_v6  ;;  %v268_v38 = vstv %s240_s6  ;;  %v277_v40 = vstv %s242_s9  ;;  %s637_s6 = sshll.u32 %s726_s26, 4  ;;  %s638_s6 = int_to_ptr.vmem [resolvable:$false] %s637_s6 }
  0x4a   : > { %v262_v11 = vmul.f32 1.442695, %v261_v7  ;;  %v271_v12 = vmul.f32 1.442695, %v270_v8  ;;  %v280_v13 = vmul.f32 1.442695, %v279_v9  ;;  %v286_v43 = vstv %s244_s14  ;;  %p635_p0 = pnand %p634_p8, %p801_p9  ;;  %p640_p5 = scmp.lt.s32.totalorder %s349_s12, %s638_s6 }
  0x4b   : > { %v289_v14 = vmul.f32 1.442695, %v288_v10  ;;  %v269_v39 = vsel %vm265_vm0, %v268_v38, 0.0  ;;  %v295_v46 = vstv %s246_s21  ;;  %s639_s18 = scalar_lea.vmem %s638_s6, 256 }
  0x4c   : > { %555 = vpow2.f32 %v262_v11  ;;  %v278_v42 = vsel %vm274_vm1, %v277_v40, %v269_v39  ;;  %p636_p2 = pneg %p635_p0  ;;  %p641_p6 = scmp.lt.s32.totalorder %s639_s18, %s633_s5 }
  0x4d   : > { %557 = vpow2.f32 %v271_v12  ;;  %v287_v45 = vsel %vm283_vm2, %v286_v43, %v278_v42 }
  0x4e   : > { %559 = vpow2.f32 %v280_v13  ;;  %v296_v49 = vsel %vm292_vm3, %v295_v46, %v287_v45  ;;  %p642_p4 = por %p641_p6, %p640_p5 }
  0x4f   : > { %561 = vpow2.f32 %v289_v14 }
  0x50   : > { %p643_p7 = pnand %p642_p4, %p636_p2 }
  0x59   : > { %v556_v15 = vpop.eup %555 }
  0x5a   : > { %v558_v16 = vpop.eup %557  ;;  %v267_v23 = vsel %vm265_vm0, %v556_v15, 0.0 }
  0x5b   : > { %v560_v17 = vpop.eup %559  ;;  %v273_v18 = vadd.f32 %v558_v16, %v556_v15  ;;  %v276_v24 = vsel %vm274_vm1, %v558_v16, %v267_v23 }
  0x5c   : > { %v562_v19 = vpop.eup %561  ;;  %v285_v26 = vsel %vm283_vm2, %v560_v17, %v276_v24 }
  0x5d   : > { %v282_v20 = vadd.f32 %v560_v17, %v273_v18  ;;  %v294_v28 = vsel %vm292_vm3, %v562_v19, %v285_v26 }
  0x5f   : > { %v291_v22 = vadd.f32 %v562_v19, %v282_v20 }
  0x61   : > { %563 = vrcp.f32 %v291_v22 }
  0x62   : > { %565 = vlog2.f32 %v291_v22 }
  0x6e   : > { %v564_v29 = vpop.eup %563 }
  0x6f   : > { %v303_v31 = vmul.f32 %v564_v29, %v294_v28  ;;  %v566_v33 = vpop.eup %565 }
  0x70   : > { %v299_v37 = vmul.f32 0.6931472, %v566_v33 }
  0x71   : > { %v304_v32 = vsub.f32 1.0, %v303_v31 }
  0x72   : > { %v300_v41 = vsub.f32 %v297_v36, %v299_v37 }
  0x73   : > { %v305_v35 = vmax.f32 %v304_v32, 0.0 }
  0x74   : > { %v301_v44 = vmax.f32 %v300_v41, -1000.0 }
  0x75   : > { %567 = vrsqrt.f32 %v305_v35  ;;  %vm308_vm4 = vcmp.eq.f32.partialorder %v305_v35, inf  ;;  %v311_v50 = vand.u32 2147483648, %v305_v35  ;;  %vm310_vm5 = vcmp.eq.f32.partialorder %v305_v35, 0.0 }
  0x76   : > { %v314_v47 = vsub.f32 0.0, %v301_v44 }
  0x78   : > { %v315_v53 = vmul.f32 %v314_v47, %v296_v49 }
  0x82   : > { %v568_v48 = vpop.eup %567 }
  0x83   : > { %v307_v51 = vmul.f32 %v568_v48, %v305_v35 }
  0x85   : > { %v309_v52 = vsel %vm308_vm4, %v305_v35, %v307_v51 }
  0x86   : > { %v312_v54 = vsel %vm310_vm5, %v311_v50, %v309_v52 }
  0x87   : > { %v313_v55 = vmul.f32 %v312_v54, %v305_v35 }
  0x89   : > { %v316_v56 = vmul.f32 %v315_v53, %v313_v55 }
  0x8b   : > { %v330_v57 = vmul.f32 0.00048828125, %v316_v56 }
  0x8d   : > { %331 = vst [vmem:[%s236_s10] sm:$0xff] %v330_v57 }
  0x8e   : > { %646 = shalt.err (!%p643_p7)
}
  0x8f   : > { %s647_s11 = scalar_lea.hbm %s346_s25, 128  ;;  %s651_s9 = scalar_lea.hbm %s932_s3, 256 }
  0x90   : > { %p648_p1 = scmp.ne.s32.totalorder %s346_s25, %s647_s11  ;;  %p652_p3 = scmp.lt.s32.totalorder %s346_s25, %s932_s3 }
  0x91   : > { %p653_p8 = scmp.lt.s32.totalorder %s651_s9, %s647_s11 }
  0x92   : > { %p649_p10 = pnand %p648_p1, %p801_p9 }
  0x93   : > { %p654_p0 = por %p653_p8, %p652_p3 }
  0x94   : > { %p650_p13 = pneg %p649_p10 }
  0x96   : > { %p655_p12 = pnand %p654_p0, %p650_p13 }
  0x98   : > { %658 = shalt.err (!%p655_p12)
}
  0x99   : > { %488 = dma.vmem_to_hbm [thread:$0]  (%p801_p9), %s349_s12, 128, %s346_s25, %s333_s4  }
  0x9a PF: > { %s360_s20 = sand.u32 1, %s699_s15   ;;  %p939_p2 = scmp.ge.s32.totalorder %s719_s0, 2 }
  0x9b   : > { %s361_s21 = scalar_lea.sflag [#allocation6], %s360_s20 }
  0x9c   : > { %p498_p5 = pnand %p939_p2, %p808_p11 }
  0x9e   : > { %p499_p6 = pneg %p498_p5 }
  0xa0   : > { %694 = dma.done.wait (%p499_p6), %s361_s21, 128  }
  0xa1   : > { %696 = vsyncadd (%p499_p6), %s361_s21, 4294967168  ;;  %s26_s0 = sadd.s32 1, %s719_s0   ;;  %s940_s15 = smov %s703_s16 }
  0xa2   : > { %p23_p4 = scmp.ge.s32.totalorder %s26_s0, 4   ;;  %s941_s16 = smov %s707_s17 }
  0xa3   : > { %s942_s17 = smov %s806_s28  ;;  %s943_s18 = smov %s715_s19 }
  0xa4   : > { %s944_s19 = smov %s946_s22  ;;  %25 = sbr.rel (!%p23_p4) target bundleno = 13 (0xd), region = 97 }
  0xa9   :  { %366 = vsyncpa [#allocation5], 1 }
  0xaa   :  { %368 = vsyncpa [#allocation5 + $0x1], 1 }
  0xab   :  { %369 = vsyncpa [#allocation8], 1 }
  0xac   :  { %371 = vsyncpa [#allocation8 + $0x1], 1 }
  0xad   :  { %372 = vsyncpa [#allocation6], 1 }
  0xae   :  { %374 = vsyncpa [#allocation6 + $0x1], 1 }

</bundles_post_ra>
